<compile_context>
chip_gen: v7x
topology: tpu7x:2x2x1
jax: 0.10.0
libtpu: 0.0.40
codegen_flags: <defaults>
</compile_context>

<pallas_src>
import functools

import jax
import jax.numpy as jnp
from jax.experimental import pallas as pl
from jax.experimental.pallas import tpu as pltpu

GAMMA = 1.0 / 100.0

_LANE = 128
_SUBLANE = 8
_WIDTHS = (2048, 1024, 512, 256, 128)   # candidate lane-dense slab widths
_PAD_WIDTH = 1024                        # slab width when N is not 128-aligned


def _weak_neg_loss_kernel(x_ref, y_ref, m_ref, o_ref, *, gamma):
    x = x_ref[...].astype(jnp.float32)
    y = y_ref[...].astype(jnp.float32)
    m = m_ref[...]
    # Numerically-stable BCE-with-logits (same formula PyTorch uses):
    #   loss = max(x, 0) - x*y + log1p(exp(-|x|))
    loss = jnp.maximum(x, 0.0) - x * y + jnp.log1p(jnp.exp(-jnp.abs(x)))
    # loss *= gamma where mask == 0, expressed as a multiplicative scale:
    #   scale = gamma + (1 - gamma) * [mask != 0]
    keep = (m != 0).astype(jnp.float32)
    scale = gamma + (1.0 - gamma) * keep
    o_ref[...] = (loss * scale).astype(o_ref.dtype)


def _round_up(v, m):
    return -(-v // m) * m


def _vmem_capacity_bytes():
    try:
        return int(pltpu.get_tpu_info().vmem_capacity_bytes)
    except Exception:
        return 64 << 20  # conservative fallback (v7x per-TensorCore VMEM)


def _pick_width(n):
    for w in _WIDTHS:
        if n % w == 0:
            return w
    return None


def weak_negatives_loss(x, y, mask, gamma=GAMMA):
    """Elementwise BCE-with-logits; entries where mask == 0 are scaled by gamma.

    x: logits (any shape, float). y: targets, mask: weak-negative mask (0 = weak
    negative); y/mask may be float, int8 or bool (int8/bool saves HBM traffic).
    Returns loss with x's shape and dtype.
    """
    assert x.shape == y.shape == mask.shape, "x, y, mask must share a shape"
    orig_shape = x.shape
    out_dtype = x.dtype

    fx = x.reshape(-1)
    fy = y.reshape(-1)
    fm = mask.reshape(-1)
    n = fx.shape[0]
    if n == 0:
        return jnp.zeros(orig_shape, out_dtype)

    # ---- present the data as a lane-dense (rows, W) slab ----
    w = _pick_width(n)
    pad = 0
    if w is None:
        # Total size not 128-aligned: pad to a 1024-wide slab and slice later.
        w = _PAD_WIDTH
        n_pad = _round_up(n, w)
        pad = n_pad - n
        fx = jnp.pad(fx, (0, pad))
        fy = jnp.pad(fy, (0, pad))
        fm = jnp.pad(fm, (0, pad), constant_values=1)
    rows = fx.shape[0] // w
    x2 = fx.reshape(rows, w)
    y2 = fy.reshape(rows, w)
    m2 = fm.reshape(rows, w)

    # ---- generation-aware tiling, derived from VMEM capacity ----
    vmem_cap = _vmem_capacity_bytes()
    vmem_limit = max(32 << 20, min(int(vmem_cap * 0.75), 100 << 20))
    bytes_per_elem = (x2.dtype.itemsize + y2.dtype.itemsize +
                      m2.dtype.itemsize + jnp.dtype(out_dtype).itemsize)
    # Double-buffered pipeline: keep 2x the per-step tile footprint under ~60%
    # of the vmem limit.
    target_elems = max(_SUBLANE * w, int(vmem_limit * 0.6) // (2 * bytes_per_elem))
    block_rows = max(_SUBLANE, (target_elems // w) // _SUBLANE * _SUBLANE)
    if block_rows >= rows:
        if rows >= 2 * _SUBLANE:
            # Whole array fits in one tile: still emit >=2 parallel grid steps
            # so both v7x TensorCores (and DMA issue from both) get used.
            block_rows = _round_up(pl.cdiv(rows, 2), _SUBLANE)
        else:
            block_rows = rows  # full dim is always a legal block size

    grid = (pl.cdiv(rows, block_rows),)
    spec = pl.BlockSpec((block_rows, w), lambda i: (i, 0))

    total = rows * w
    cost = pl.CostEstimate(
        flops=5 * total,
        transcendentals=2 * total,
        bytes_accessed=total * bytes_per_elem,
    )

    kernel = functools.partial(_weak_neg_loss_kernel, gamma=float(gamma))

    out2 = pl.pallas_call(
        kernel,
        out_shape=jax.ShapeDtypeStruct((rows, w), out_dtype),
        grid_spec=pltpu.PrefetchScalarGridSpec(
            num_scalar_prefetch=0,
            grid=grid,
            in_specs=[spec, spec, spec],
            out_specs=spec,
        ),
        compiler_params=pltpu.CompilerParams(
            dimension_semantics=("parallel",),
            vmem_limit_bytes=vmem_limit,
        ),
        cost_estimate=cost,
    )(x2, y2, m2)

    out = out2.reshape(-1)
    if pad:
        out = out[:n]
    return out.reshape(orig_shape)


def _reference(x, y, mask, gamma=GAMMA):
    # Pure-JAX reference (matches PyTorch BCEWithLogits + mask==0 scaling).
    loss = jnp.maximum(x, 0.0) - x * y + jnp.log1p(jnp.exp(-jnp.abs(x)))
    return jnp.where(mask == 0, loss * gamma, loss)


if __name__ == "__main__":
    key = jax.random.PRNGKey(0)
    k1, k2, k3 = jax.random.split(key, 3)

    # Small multi-label problem: batch of 16 samples, 128-way targets.
    B, C = 16, 128
    x = jax.random.normal(k1, (B, C), dtype=jnp.float32) * 2.0            # logits
    y = (jax.random.uniform(k2, (B, C)) > 0.7).astype(jnp.float32)        # binarized targets
    mask_f = (jax.random.uniform(k3, (B, C)) > 0.5).astype(jnp.float32)   # 0 = weak negative

    ref = _reference(x, y, mask_f)

    # 1) float32 y/mask: exact PyTorch-style call.
    out_f = jax.block_until_ready(weak_negatives_loss(x, y, mask_f))
    assert out_f.shape == x.shape and out_f.dtype == x.dtype
    assert jnp.allclose(out_f, ref, atol=1e-5, rtol=1e-5), "float-mask mismatch"

    # 2) int8 y + int8 mask: ~half the read traffic, identical semantics for {0,1}.
    out_i = jax.block_until_ready(
        weak_negatives_loss(x, y.astype(jnp.int8), mask_f.astype(jnp.int8)))
    assert jnp.allclose(out_i, ref, atol=1e-5, rtol=1e-5), "int8-y/mask mismatch"

    # 3) Multi-tile grid (total elements divisible by a lane-dense width).
    B2, C2 = 200, 256
    x2 = jax.random.normal(k1, (B2, C2), dtype=jnp.float32) * 2.0
    y2 = (jax.random.uniform(k2, (B2, C2)) > 0.7).astype(jnp.float32)
    m2 = (jax.random.uniform(k3, (B2, C2)) > 0.5).astype(jnp.float32)
    out2 = jax.block_until_ready(weak_negatives_loss(x2, y2, m2))
    assert jnp.allclose(out2, _reference(x2, y2, m2), atol=1e-5, rtol=1e-5), \
        "multi-tile mismatch"

    # 4) Ragged / non-128-aligned element count (pad + slice path).
    B3, C3 = 7, 50
    x3 = jax.random.normal(k1, (B3, C3), dtype=jnp.float32) * 2.0
    y3 = (jax.random.uniform(k2, (B3, C3)) > 0.7).astype(jnp.float32)
    m3 = (jax.random.uniform(k3, (B3, C3)) > 0.5).astype(jnp.float32)
    out3 = jax.block_until_ready(weak_negatives_loss(x3, y3, m3))
    assert jnp.allclose(out3, _reference(x3, y3, m3), atol=1e-5, rtol=1e-5), \
        "ragged-shape mismatch"

    print("KERNEL_OK")
</pallas_src>

<mosaic_0001>
module attributes {stable_mosaic.version = 11 : i64} {
  func.func @_weak_neg_loss_kernel(%arg0: i32, %arg1: memref<1x2048xf32, #tpu.memory_space<vmem>>, %arg2: memref<1x2048xf32, #tpu.memory_space<vmem>>, %arg3: memref<1x2048xf32, #tpu.memory_space<vmem>>, %arg4: memref<1x2048xf32, #tpu.memory_space<vmem>>) attributes {dimension_semantics = [#tpu.dimension_semantics<parallel>], iteration_bounds = array<i64: 1>, scalar_prefetch = 0 : i64, scratch_operands = 0 : i64, tpu.core_type = #tpu.core_type<tc>, window_params = [{transform_indices = @transform_0, window_bounds = array<i64: 1, 2048>}, {transform_indices = @transform_1, window_bounds = array<i64: 1, 2048>}, {transform_indices = @transform_2, window_bounds = array<i64: 1, 2048>}, {transform_indices = @transform_3, window_bounds = array<i64: 1, 2048>}]} {
    %c0 = arith.constant 0 : index
    %c0_0 = arith.constant 0 : index
    %0 = vector.load %arg1[%c0, %c0_0] : memref<1x2048xf32, #tpu.memory_space<vmem>>, vector<1x2048xf32>
    %c0_1 = arith.constant 0 : index
    %c0_2 = arith.constant 0 : index
    %1 = vector.load %arg2[%c0_1, %c0_2] : memref<1x2048xf32, #tpu.memory_space<vmem>>, vector<1x2048xf32>
    %c0_3 = arith.constant 0 : index
    %c0_4 = arith.constant 0 : index
    %2 = vector.load %arg3[%c0_3, %c0_4] : memref<1x2048xf32, #tpu.memory_space<vmem>>, vector<1x2048xf32>
    %cst = arith.constant 0.000000e+00 : f32
    %3 = vector.broadcast %cst : f32 to vector<1x2048xf32>
    %4 = arith.maximumf %0, %3 : vector<1x2048xf32>
    %5 = arith.mulf %0, %1 : vector<1x2048xf32>
    %6 = arith.subf %4, %5 : vector<1x2048xf32>
    %7 = math.absf %0 : vector<1x2048xf32>
    %cst_5 = arith.constant 0.000000e+00 : f32
    %8 = vector.broadcast %cst_5 : f32 to vector<1x2048xf32>
    %9 = arith.subf %8, %7 : vector<1x2048xf32>
    %10 = math.exp %9 : vector<1x2048xf32>
    %11 = math.log1p %10 : vector<1x2048xf32>
    %12 = arith.addf %6, %11 : vector<1x2048xf32>
    %cst_6 = arith.constant 0.000000e+00 : f32
    %13 = vector.broadcast %cst_6 : f32 to vector<1x2048xf32>
    %14 = arith.cmpf one, %2, %13 : vector<1x2048xf32>
    %15 = arith.extui %14 : vector<1x2048xi1> to vector<1x2048xi32>
    %16 = arith.sitofp %15 : vector<1x2048xi32> to vector<1x2048xf32>
    %cst_7 = arith.constant 9.900000e-01 : f32
    %17 = vector.broadcast %cst_7 : f32 to vector<1x2048xf32>
    %18 = arith.mulf %17, %16 : vector<1x2048xf32>
    %cst_8 = arith.constant 0.00999999977 : f32
    %19 = vector.broadcast %cst_8 : f32 to vector<1x2048xf32>
    %20 = arith.addf %19, %18 : vector<1x2048xf32>
    %21 = arith.mulf %12, %20 : vector<1x2048xf32>
    %c0_9 = arith.constant 0 : index
    %c0_10 = arith.constant 0 : index
    %22 = vector.load %arg4[%c0_9, %c0_10] : memref<1x2048xf32, #tpu.memory_space<vmem>>, vector<1x2048xf32>
    tpu.vector_store %arg4[%c0_9, %c0_10], %21 {strides = array<i32>} : memref<1x2048xf32, #tpu.memory_space<vmem>>, vector<1x2048xf32>,
    return
  }
  func.func @transform_0(%arg0: i32) -> (i32, i32) {
    %c0_i32 = arith.constant 0 : i32
    %c0_i32_0 = arith.constant 0 : i32
    return %arg0, %c0_i32 : i32, i32
  }
  func.func @transform_1(%arg0: i32) -> (i32, i32) {
    %c0_i32 = arith.constant 0 : i32
    %c0_i32_0 = arith.constant 0 : i32
    return %arg0, %c0_i32 : i32, i32
  }
  func.func @transform_2(%arg0: i32) -> (i32, i32) {
    %c0_i32 = arith.constant 0 : i32
    %c0_i32_0 = arith.constant 0 : i32
    return %arg0, %c0_i32 : i32, i32
  }
  func.func @transform_3(%arg0: i32) -> (i32, i32) {
    %c0_i32 = arith.constant 0 : i32
    %c0_i32_0 = arith.constant 0 : i32
    return %arg0, %c0_i32 : i32, i32
  }
}

</mosaic_0001>

<bundles_post_ra>
// kernel: tpu_custom_call.1
= control target key start
LH: loop header
LB: loop body
LE: loop exit
PB: predicated region body
PF: predicated region fallthrough
CT: control target
= control target key end

     0   :  { %8 = vsyncpa [#allocation3], 0  ;;  %s302_s0 = inlined_call_operand.hbm [shape: f32[1,2048], index: 0, kind: input, shape index: {}]   ;;  %s303_s1 = inlined_call_operand.hbm [shape: f32[1,2048], index: 1, kind: input, shape index: {}]   ;;  %s304_s2 = inlined_call_operand.hbm [shape: f32[1,2048], index: 2, kind: input, shape index: {}]   ;;  %s305_s3 = inlined_call_operand.hbm [shape: f32[1,2048], index: 3, kind: output, shape index: {}]  }
   0x1   :  { %9 = vsyncpa [#allocation6], 0 }
   0x2   :  { %10 = vsyncpa [#allocation4], 0  ;;  %s229_s12 = smov [#allocation5]   ;;  %s230_s14 = smov [#allocation2]  }
   0x3   :  { %s27_s13 = sshll.u32 %s229_s12, 4  ;;  %s17_s15 = sshll.u32 %s230_s14, 4  ;;  %s28_s13 = int_to_ptr.vmem [resolvable:$true] %s27_s13  ;;  %s18_s15 = int_to_ptr.vmem [resolvable:$true] %s17_s15 }
   0x4   :  { %s135_s18 = scalar_lea.hbm %s303_s1, 256 }
   0x5   :  { %p136_p0 = scmp.ne.s32.totalorder %s303_s1, %s135_s18  ;;  %p139_p1 = scmp.lt.u32.totalorder %s135_s18, %s303_s1 }
   0x7   :  { %p141_p2 = pnand %p139_p1, %p136_p0 }
   0x9   :  { %144 = shalt.err (!%p141_p2)
}
   0xa   :  { %s145_s23 = scalar_lea.vmem %s28_s13, 256  ;;  %p150_p4 = scmp.lt.s32.totalorder %s28_s13, %s28_s13 }
   0xb   :  { %p146_p3 = scmp.ne.s32.totalorder %s28_s13, %s145_s23  ;;  %p151_p5 = scmp.lt.s32.totalorder %s145_s23, %s145_s23 }
   0xd   :  { %p152_p6 = por %p151_p5, %p150_p4 }
   0xf   :  { %p153_p7 = pnand %p152_p6, %p146_p3 }
  0x11   :  { %156 = shalt.err (!%p153_p7)
}
  0x12   :  { %30 = dma.hbm_to_vmem [thread:$0]  %s303_s1, 256, %s28_s13, [#allocation6]  }
  0x13   :  { %s157_s28 = scalar_lea.hbm %s302_s0, 256 }
  0x14   :  { %p158_p8 = scmp.ne.s32.totalorder %s302_s0, %s157_s28  ;;  %p161_p9 = scmp.lt.u32.totalorder %s157_s28, %s302_s0 }
  0x16   :  { %p163_p10 = pnand %p161_p9, %p158_p8 }
  0x18   :  { %166 = shalt.err (!%p163_p10)
}
  0x19   :  { %s167_s6 = scalar_lea.vmem %s18_s15, 256  ;;  %p172_p12 = scmp.lt.s32.totalorder %s18_s15, %s18_s15 }
  0x1a   :  { %p168_p11 = scmp.ne.s32.totalorder %s18_s15, %s167_s6  ;;  %p173_p13 = scmp.lt.s32.totalorder %s167_s6, %s167_s6 }
  0x1c   :  { %p174_p0 = por %p173_p13, %p172_p12 }
  0x1e   :  { %p175_p1 = pnand %p174_p0, %p168_p11 }
  0x20   :  { %178 = shalt.err (!%p175_p1)
}
  0x21   :  { %20 = dma.hbm_to_vmem [thread:$0]  %s302_s0, 256, %s18_s15, [#allocation3]  }
  0x22   :  { %s231_s8 = smov [#allocation7]   ;;  %s179_s12 = scalar_lea.hbm %s304_s2, 256 }
  0x23   :  { %s37_s9 = sshll.u32 %s231_s8, 4  ;;  %p180_p2 = scmp.ne.s32.totalorder %s304_s2, %s179_s12  ;;  %s38_s9 = int_to_ptr.vmem [resolvable:$true] %s37_s9 }
  0x24   :  { %p183_p3 = scmp.lt.u32.totalorder %s179_s12, %s304_s2 }
  0x26   :  { %p185_p4 = pnand %p183_p3, %p180_p2 }
  0x28   :  { %188 = shalt.err (!%p185_p4)
}
  0x29   :  { %s189_s18 = scalar_lea.vmem %s38_s9, 256  ;;  %p194_p6 = scmp.lt.s32.totalorder %s38_s9, %s38_s9 }
  0x2a   :  { %p190_p5 = scmp.ne.s32.totalorder %s38_s9, %s189_s18  ;;  %p195_p7 = scmp.lt.s32.totalorder %s189_s18, %s189_s18 }
  0x2c   :  { %p196_p8 = por %p195_p7, %p194_p6 }
  0x2e   :  { %p197_p9 = pnand %p196_p8, %p190_p5 }
  0x30   :  { %200 = shalt.err (!%p197_p9)
}
  0x31   :  { %40 = dma.hbm_to_vmem [thread:$0]  %s304_s2, 256, %s38_s9, [#allocation6]  }
  0x32   :  { %223 = dma.done.wait [#allocation3], 256  }
  0x33   :  { %224 = vsyncadd [#allocation3], 4294967040 }
  0x34   :  { %225 = dma.done.wait [#allocation6], 512  }
  0x35   :  { %226 = vsyncadd [#allocation6], 4294966784  ;;  %v50_v0 = vld [vmem:[#allocation2] sm:$0xff]  ;;  %v51_v2 = vld [vmem:[#allocation2 + $0x8] sm:$0xff]  ;;  %v232_v20 = vmov 0.0   ;;  %s233_s2 = smov [#allocation8]  }
  0x36   :  { %v62_v1 = vand.u32 2147483647, %v50_v0  ;;  %v63_v3 = vand.u32 2147483647, %v51_v2  ;;  %v54_v11 = vld [vmem:[#allocation7] sm:$0xff]  ;;  %v55_v13 = vld [vmem:[#allocation7 + $0x8] sm:$0xff] }
  0x37   :  { %vm90_vm0 = vcmp.ne.f32.partialorder %v54_v11, 0.0  ;;  %v52_v16 = vld [vmem:[#allocation5] sm:$0xff]  ;;  %vm91_vm1 = vcmp.ne.f32.partialorder %v55_v13, 0.0  ;;  %v53_v17 = vld [vmem:[#allocation5 + $0x8] sm:$0xff]  ;;  %v56_v18 = vmax.f32 %v50_v0, 0.0  ;;  %v57_v26 = vmax.f32 %v51_v2, 0.0 }
  0x38   :  { %v64_v4 = vsub.f32 0.0, %v62_v1  ;;  %v65_v5 = vsub.f32 0.0, %v63_v3  ;;  %v120_v21 = vsel %vm90_vm0, 1.0, %v232_v20  ;;  %v58_v22 = vmul.f32 %v52_v16, %v50_v0  ;;  %s110_s19 = sshll.u32 %s233_s2, 4  ;;  %s111_s19 = int_to_ptr.vmem [resolvable:$true] %s110_s19 }
  0x39   :  { %v121_v25 = vsel %vm91_vm1, 1.0, %v232_v20  ;;  %v59_v27 = vmul.f32 %v53_v17, %v51_v2  ;;  %v96_v29 = vmul.f32 0.99, %v120_v21  ;;  %s201_s20 = scalar_lea.vmem %s111_s19, 256  ;;  %p206_p11 = scmp.lt.s32.totalorder %s111_s19, %s111_s19 }
  0x3a   :  { %v66_v6 = vmul.f32 1.442695, %v64_v4  ;;  %v68_v7 = vmul.f32 1.442695, %v65_v5  ;;  %v97_v31 = vmul.f32 0.99, %v121_v25  ;;  %v60_v33 = vsub.f32 %v56_v18, %v58_v22  ;;  %p202_p10 = scmp.ne.s32.totalorder %s111_s19, %s201_s20  ;;  %p207_p12 = scmp.lt.s32.totalorder %s201_s20, %s201_s20 }
  0x3b   :  { %v61_v37 = vsub.f32 %v57_v26, %v59_v27  ;;  %v98_v38 = vadd.f32 0.01, %v96_v29 }
  0x3c   :  { %127 = vpow2.f32 %v66_v6  ;;  %v99_v41 = vadd.f32 0.01, %v97_v31  ;;  %p208_p13 = por %p207_p12, %p206_p11 }
  0x3d   :  { %129 = vpow2.f32 %v68_v7 }
  0x3e   :  { %p209_p0 = pnand %p208_p13, %p202_p10 }
  0x46   :  { %v128_v8 = vpop.eup %127 }
  0x47   :  { %v130_v9 = vpop.eup %129  ;;  %v70_v10 = vadd.f32 1.0, %v128_v8  ;;  %v73_v14 = vmul.f32 -0.5, %v128_v8  ;;  %v76_v23 = vand.u32 2147483647, %v128_v8 }
  0x48   :  { %v79_v12 = vadd.f32 1.0, %v130_v9  ;;  %v82_v15 = vmul.f32 -0.5, %v130_v9  ;;  %v85_v28 = vand.u32 2147483647, %v130_v9 }
  0x49   :  { %131 = vlog2.f32 %v70_v10  ;;  %v74_v19 = vadd.f32 1.0, %v73_v14  ;;  %vm77_vm2 = vcmp.lt.f32.partialorder %v76_v23, 0.0004427343 }
  0x4a   :  { %133 = vlog2.f32 %v79_v12  ;;  %v83_v24 = vadd.f32 1.0, %v82_v15  ;;  %vm86_vm3 = vcmp.lt.f32.partialorder %v85_v28, 0.0004427343 }
  0x4b   :  { %v75_v30 = vmul.f32 %v128_v8, %v74_v19 }
  0x4c   :  { %v84_v34 = vmul.f32 %v130_v9, %v83_v24 }
  0x53   :  { %v132_v32 = vpop.eup %131 }
  0x54   :  { %v134_v35 = vpop.eup %133  ;;  %v72_v36 = vmul.f32 0.6931472, %v132_v32 }
  0x55   :  { %v81_v39 = vmul.f32 0.6931472, %v134_v35 }
  0x56   :  { %v78_v40 = vsel %vm77_vm2, %v75_v30, %v72_v36 }
  0x57   :  { %v88_v42 = vadd.f32 %v78_v40, %v60_v33  ;;  %v87_v43 = vsel %vm86_vm3, %v84_v34, %v81_v39 }
  0x58   :  { %v89_v44 = vadd.f32 %v87_v43, %v61_v37 }
  0x59   :  { %v100_v45 = vmul.f32 %v98_v38, %v88_v42 }
  0x5a   :  { %v101_v46 = vmul.f32 %v99_v41, %v89_v44 }
  0x5b   :  { %102 = vst [vmem:[#allocation8] sm:$0xff] %v100_v45 }
  0x5c   :  { %103 = vst [vmem:[#allocation8 + $0x8] sm:$0xff] %v101_v46 }
  0x5d   :  { %212 = shalt.err (!%p209_p0)
}
  0x5e   :  { %s213_s23 = scalar_lea.hbm %s305_s3, 256 }
  0x5f   :  { %p214_p1 = scmp.ne.s32.totalorder %s305_s3, %s213_s23  ;;  %p217_p2 = scmp.lt.u32.totalorder %s213_s23, %s305_s3 }
  0x61   :  { %p219_p3 = pnand %p217_p2, %p214_p1 }
  0x63   :  { %222 = shalt.err (!%p219_p3)
}
  0x64   :  { %113 = dma.vmem_to_hbm [thread:$0]  %s111_s19, 256, %s305_s3, [#allocation4]  }
  0x65   :  { %227 = dma.done.wait [#allocation4], 256  }
  0x66   :  { %228 = vsyncadd [#allocation4], 4294967040 }
  0x67   :  { %117 = vsyncpa [#allocation3], 1 }
  0x68   :  { %118 = vsyncpa [#allocation6], 1 }
  0x69   :  { %119 = vsyncpa [#allocation4], 1 }

</bundles_post_ra>
